<compile_context>
chip_gen: v7x
topology: tpu7x:2x2x1
jax: 0.10.0
libtpu: 0.0.40
codegen_flags: <defaults>
</compile_context>

<pallas_src>
import numpy as np

import jax
import jax.numpy as jnp
from jax.experimental import pallas as pl
from jax.experimental.pallas import tpu as pltpu


_LANE = 128
_MAX_ROW_WIDTH = 8192  # cap on lane-dense row width C (elements)


def _drop_path_kernel(scale_ref, x_ref, o_ref):
    """One grid step: (TR, C) row tile times its (TR, 1) per-row scale."""
    o_ref[...] = x_ref[...] * scale_ref[...]


def _largest_aligned_divisor(n, cap):
    """Largest multiple-of-128 divisor of n (n % 128 == 0) that is <= cap."""
    k = n // _LANE
    best = 1
    d = 1
    while d * d <= k:
        if k % d == 0:
            for cand in (d, k // d):
                if cand * _LANE <= cap and cand > best:
                    best = cand
        d += 1
    return best * _LANE


def _choose_layout(flat):
    """Per-sample padded size and lane-dense row width C (C % 128 == 0)."""
    padded = ((flat + _LANE - 1) // _LANE) * _LANE
    c = _largest_aligned_divisor(padded, _MAX_ROW_WIDTH)
    return c, padded


def _vmem_capacity_bytes():
    try:
        return int(pltpu.get_tpu_info().vmem_capacity_bytes)
    except Exception:
        return 64 * 1024 * 1024  # conservative (v7x-sized) fallback


def _pick_row_tile(r_tot, c, itemsize):
    """Pick a row-tile TR and a safe scoped-VMEM limit."""
    vmem_cap = _vmem_capacity_bytes()
    # v5e/v6e (128 MiB) -> 64 MiB scoped; v7x (64 MiB) -> 32 MiB scoped.
    vmem_limit = int(min(vmem_cap // 2, 64 * 1024 * 1024))
    # 2 streams (in + out), double-buffered -> 4 resident tiles + slack.
    tile_target = max(512 * 1024, min(6 * 1024 * 1024, vmem_limit // 5))
    rows_target = max(1, tile_target // max(1, c * itemsize))
    if r_tot <= rows_target:
        return r_tot, vmem_limit  # single full-extent tile

    align = max(8, 32 // itemsize)  # sublane packing: f32=8, bf16=16, int8=32
    cap = max(align, (rows_target // align) * align)
    floor = max(align, cap // 4)
    # Prefer a TR that divides r_tot (no ragged, masked last tile); among
    # divisors prefer an even step count (balances v7x's two TensorCores).
    best_tr, best_key = cap, (-1, -1)
    t = cap
    while t >= floor:
        if r_tot % t == 0:
            steps = r_tot // t
            key = (1 if (steps % 2 == 0) else 0, t)
            if key > best_key:
                best_key, best_tr = key, t
        t -= align
    return best_tr, vmem_limit


def drop_path(x, *, key, drop_prob=0.0, training=False, scale_by_keep=True):
    """Pallas implementation of timm-style drop_path (per-sample drop)."""
    if drop_prob == 0.0 or not training:
        return x
    keep_prob = 1.0 - drop_prob
    b = int(x.shape[0])
    flat = int(np.prod(x.shape[1:]))
    itemsize = jnp.dtype(x.dtype).itemsize

    # Per-sample keep decision (standard JAX PRNG, wrapper side).
    keep = jax.random.bernoulli(key, p=keep_prob, shape=(b,))
    scale_val = (1.0 / keep_prob) if (scale_by_keep and keep_prob > 0.0) else 1.0
    scale = jnp.where(keep,
                      jnp.asarray(scale_val, x.dtype),
                      jnp.asarray(0.0, x.dtype))

    # Lane-dense layout: each sample padded to Rp rows of width C.
    c, padded = _choose_layout(flat)
    rp = padded // c
    r_tot = b * rp
    x2 = x.reshape(b, flat)
    if padded != flat:
        x2 = jnp.pad(x2, ((0, 0), (0, padded - flat)))
    x2 = x2.reshape(r_tot, c)
    scale_rows = jnp.repeat(scale, rp).reshape(r_tot, 1)

    tr, vmem_limit = _pick_row_tile(r_tot, c, itemsize)
    grid = (pl.cdiv(r_tot, tr),)

    out = pl.pallas_call(
        _drop_path_kernel,
        out_shape=jax.ShapeDtypeStruct((r_tot, c), x.dtype),
        grid=grid,
        in_specs=[pl.BlockSpec((tr, 1), lambda r: (r, 0)),   # per-row scale
                  pl.BlockSpec((tr, c), lambda r: (r, 0))],  # activation rows
        out_specs=pl.BlockSpec((tr, c), lambda r: (r, 0)),
        input_output_aliases={1: 0},  # write in place on the activation slab
        compiler_params=pltpu.CompilerParams(
            dimension_semantics=("parallel",),
            vmem_limit_bytes=vmem_limit),
    )(scale_rows, x2)

    out = out.reshape(b, padded)
    if padded != flat:
        out = out[:, :flat]
    return out.reshape(x.shape)


class DropPath:
    """Drop paths (Stochastic Depth) per sample (main path of residual blocks)."""

    def __init__(self, drop_prob: float = 0.0, scale_by_keep: bool = True):
        self.drop_prob = drop_prob
        self.scale_by_keep = scale_by_keep

    def __call__(self, x, *, key=None, seed=0, training=True):
        if key is None:
            key = jax.random.PRNGKey(seed)
        return drop_path(x, key=key, drop_prob=self.drop_prob,
                         training=training, scale_by_keep=self.scale_by_keep)


if __name__ == "__main__":
    key = jax.random.PRNGKey(0)
    k_data, k_data2, k_drop = jax.random.split(key, 3)

    module = DropPath(drop_prob=0.25, scale_by_keep=True)
    keep_prob = 1.0 - module.drop_prob

    # Case 1: lane-aligned payload (flat = 4*16*16 = 1024).
    x = jax.random.normal(k_data, (2, 4, 16, 16), dtype=jnp.float32)
    y = jax.block_until_ready(module(x, key=k_drop, training=True))
    x_np, y_np = np.asarray(x), np.asarray(y)
    for i in range(x.shape[0]):
        kept = np.allclose(y_np[i], x_np[i] / keep_prob, rtol=1e-5, atol=1e-5)
        dropped = np.allclose(y_np[i], 0.0, atol=1e-6)
        assert kept or dropped, (
            f"sample {i}: output is not a per-sample scaling of input")

    # Case 2: non-128-aligned payload (flat = 3*5*7 = 105) exercises padding.
    x2 = jax.random.normal(k_data2, (3, 3, 5, 7), dtype=jnp.float32)
    y2 = jax.block_until_ready(module(x2, key=k_drop, training=True))
    x2_np, y2_np = np.asarray(x2), np.asarray(y2)
    for i in range(x2.shape[0]):
        kept = np.allclose(y2_np[i], x2_np[i] / keep_prob, rtol=1e-5, atol=1e-5)
        dropped = np.allclose(y2_np[i], 0.0, atol=1e-6)
        assert kept or dropped, (
            f"unaligned sample {i}: output is not a per-sample scaling of input")

    # Eval mode / drop_prob == 0: identity (no kernel launch).
    y_eval = jax.block_until_ready(module(x, training=False))
    assert np.array_equal(np.asarray(y_eval), x_np)

    print("KERNEL_OK")
</pallas_src>

<mosaic_0001>
module attributes {stable_mosaic.version = 11 : i64} {
  func.func @_drop_path_kernel(%arg0: i32, %arg1: memref<2x1xf32, #tpu.memory_space<vmem>>, %arg2: memref<2x1024xf32, #tpu.memory_space<vmem>>, %arg3: memref<2x1024xf32, #tpu.memory_space<vmem>>) attributes {dimension_semantics = [#tpu.dimension_semantics<parallel>], iteration_bounds = array<i64: 1>, scalar_prefetch = 0 : i64, scratch_operands = 0 : i64, tpu.core_type = #tpu.core_type<tc>, window_params = [{transform_indices = @transform_0, window_bounds = array<i64: 2, 1>}, {transform_indices = @transform_1, window_bounds = array<i64: 2, 1024>}, {transform_indices = @transform_2, window_bounds = array<i64: 2, 1024>}]} {
    %c0 = arith.constant 0 : index
    %c0_0 = arith.constant 0 : index
    %0 = vector.load %arg2[%c0, %c0_0] : memref<2x1024xf32, #tpu.memory_space<vmem>>, vector<2x1024xf32>
    %c0_1 = arith.constant 0 : index
    %c0_2 = arith.constant 0 : index
    %1 = vector.load %arg1[%c0_1, %c0_2] : memref<2x1xf32, #tpu.memory_space<vmem>>, vector<2x1xf32>
    %2 = vector.broadcast %1 : vector<2x1xf32> to vector<2x1024xf32>
    %3 = arith.mulf %0, %2 : vector<2x1024xf32>
    %c0_3 = arith.constant 0 : index
    %c0_4 = arith.constant 0 : index
    %4 = vector.load %arg3[%c0_3, %c0_4] : memref<2x1024xf32, #tpu.memory_space<vmem>>, vector<2x1024xf32>
    tpu.vector_store %arg3[%c0_3, %c0_4], %3 {strides = array<i32>} : memref<2x1024xf32, #tpu.memory_space<vmem>>, vector<2x1024xf32>,
    return
  }
  func.func @transform_0(%arg0: i32) -> (i32, i32) {
    %c0_i32 = arith.constant 0 : i32
    %c0_i32_0 = arith.constant 0 : i32
    return %arg0, %c0_i32 : i32, i32
  }
  func.func @transform_1(%arg0: i32) -> (i32, i32) {
    %c0_i32 = arith.constant 0 : i32
    %c0_i32_0 = arith.constant 0 : i32
    return %arg0, %c0_i32 : i32, i32
  }
  func.func @transform_2(%arg0: i32) -> (i32, i32) {
    %c0_i32 = arith.constant 0 : i32
    %c0_i32_0 = arith.constant 0 : i32
    return %arg0, %c0_i32 : i32, i32
  }
}

</mosaic_0001>

<bundles_post_ra>
// kernel: tpu_custom_call.1
= control target key start
LH: loop header
LB: loop body
LE: loop exit
PB: predicated region body
PF: predicated region fallthrough
CT: control target
= control target key end

     0   :  { %7 = vsyncpa [#allocation3], 0  ;;  %s157_s0 = inlined_call_operand.vmem [shape: f32[2,1], index: 0, kind: input, shape index: {}]   ;;  %s158_s1 = inlined_call_operand.hbm [shape: f32[2,1024], index: 1, kind: input, shape index: {}, may-alias: {1,2}]   ;;  %s159_s2 = inlined_call_operand.hbm [shape: f32[2,1024], index: 2, kind: output, shape index: {}, may-alias: {1,2}]  }
   0x1   :  { %8 = vsyncpa [#allocation4], 0  ;;  %s111_s9 = smov [#allocation2]   ;;  %s63_s13 = scalar_lea.hbm %s158_s1, 256 }
   0x2   :  { %s17_s10 = sshll.u32 %s111_s9, 4  ;;  %p64_p0 = scmp.ne.s32.totalorder %s158_s1, %s63_s13  ;;  %s18_s10 = int_to_ptr.vmem [resolvable:$true] %s17_s10 }
   0x3   :  { %p67_p1 = scmp.lt.u32.totalorder %s63_s13, %s158_s1 }
   0x5   :  { %p69_p2 = pnand %p67_p1, %p64_p0 }
   0x7   :  { %72 = shalt.err (!%p69_p2)
}
   0x8   :  { %s73_s18 = scalar_lea.vmem %s18_s10, 256  ;;  %p78_p4 = scmp.lt.s32.totalorder %s18_s10, %s18_s10 }
   0x9   :  { %p74_p3 = scmp.ne.s32.totalorder %s18_s10, %s73_s18  ;;  %p79_p5 = scmp.lt.s32.totalorder %s73_s18, %s73_s18 }
   0xb   :  { %p80_p6 = por %p79_p5, %p78_p4 }
   0xd   :  { %p81_p7 = pnand %p80_p6, %p74_p3 }
   0xf   :  { %84 = shalt.err (!%p81_p7)
}
  0x10   :  { %20 = dma.hbm_to_vmem [thread:$0]  %s158_s1, 256, %s18_s10, [#allocation3]  }
  0x11   :  { %107 = dma.done.wait [#allocation3], 256  }
  0x12   :  { %108 = vsyncadd [#allocation3], 4294967040  ;;  %v112_v0 = vmov 0   ;;  %v26_v1 = vld [vmem:[%s157_s0] sm:$0x3]  ;;  %v34_v4 = vlaneseq  ;;  %v25_v10 = vld [vmem:[#allocation2 + $0x8] sm:$0xff] }
  0x13   :  { %62 = vset.pattern.permute.xlu0 %v112_v0  ;;  %v113_v2 = vmov 269488144   ;;  %v24_v9 = vld [vmem:[#allocation2] sm:$0xff]  ;;  %s114_s23 = smov [#allocation5]  }
  0x14   :  { %29 = vperm.xlu0 %62, %v26_v1   ;;  %v32_v3 = vunpack.c.l.s4 %v113_v2  ;;  %v35_v6 = vshrl.u32 %v34_v4, 7  ;;  %s49_s1 = sshll.u32 %s114_s23, 4  ;;  %s50_s1 = int_to_ptr.vmem [resolvable:$true] %s49_s1 }
  0x15   :  { %s85_s24 = scalar_lea.vmem %s50_s1, 256  ;;  %p90_p9 = scmp.lt.s32.totalorder %s50_s1, %s50_s1 }
  0x16   :  { %v33_v5 = vunpack.c.0.s8 %v32_v3  ;;  %p86_p8 = scmp.ne.s32.totalorder %s50_s1, %s85_s24  ;;  %p91_p10 = scmp.lt.s32.totalorder %s85_s24, %s85_s24 }
  0x18   :  { %v36_v7 = vsub.s32 %v33_v5, %v35_v6  ;;  %p92_p11 = por %p91_p10, %p90_p9 }
  0x1a   :  { %p93_p12 = pnand %p92_p11, %p86_p8 }
  0x93   :  { %v30_v8 = vpop.permute.xlu0 %29 }
  0x94   :  { %v37_v11 = vrot.slane %v30_v8, %v36_v7 }
  0x96   :  { %v39_v12 = vmul.f32 %v37_v11, %v24_v9  ;;  %v40_v13 = vmul.f32 %v37_v11, %v25_v10 }
  0x98   :  { %41 = vst [vmem:[#allocation5] sm:$0xff] %v39_v12  ;;  %42 = vst [vmem:[#allocation5 + $0x8] sm:$0xff] %v40_v13 }
  0x99   :  { %96 = shalt.err (!%p93_p12)
}
  0x9a   :  { %s97_s26 = scalar_lea.hbm %s159_s2, 256 }
  0x9b   :  { %p98_p13 = scmp.ne.s32.totalorder %s159_s2, %s97_s26  ;;  %p101_p0 = scmp.lt.u32.totalorder %s97_s26, %s159_s2 }
  0x9d   :  { %p103_p1 = pnand %p101_p0, %p98_p13 }
  0x9f   :  { %106 = shalt.err (!%p103_p1)
}
  0xa0   :  { %52 = dma.vmem_to_hbm [thread:$0]  %s50_s1, 256, %s159_s2, [#allocation4]  }
  0xa1   :  { %109 = dma.done.wait [#allocation4], 256  }
  0xa2   :  { %110 = vsyncadd [#allocation4], 4294967040 }
  0xa3   :  { %56 = vsyncpa [#allocation3], 1 }
  0xa4   :  { %57 = vsyncpa [#allocation4], 1 }

</bundles_post_ra>
